<compile_context>
chip_gen: v7x
topology: tpu7x:2x2x1
jax: 0.10.0
libtpu: 0.0.40
codegen_flags: <defaults>
</compile_context>

<pallas_src>
import jax
import jax.numpy as jnp
from jax.experimental import pallas as pl
from jax.experimental.pallas import tpu as pltpu


def _round_up(v, m):
    return ((v + m - 1) // m) * m


def _tpu_generation_info():
    """Returns (tensorcores sharing the 'parallel' grid axis, VMEM budget bytes)."""
    try:
        kind = jax.devices()[0].device_kind.lower()
    except Exception:
        kind = ""
    if "v7" in kind:
        return 2, 40 * 1024 * 1024          # 64 MiB physical, shared w/ Mosaic scratch
    if "v4" in kind or "v3" in kind:
        return 2, 64 * 1024 * 1024          # megacore
    # v5e / v6e (and unknown): single TC, 128 MiB physical VMEM
    return 1, 96 * 1024 * 1024


def _attn_kernel(thresh_ref, x_ref, w_ref, b_ref, out_ref, outf_ref, alpha_ref):
    # thresh_ref : SMEM (1,)            precomputed 0.1 / gamma
    # x_ref      : VMEM (bb, T, D)      bb batches of the input
    # w_ref      : VMEM (D, Fp)         pre-transposed, F-padded weight (x.dtype)
    # b_ref      : VMEM (1, Fp)         F-padded bias (f32)
    # out_ref    : VMEM (bb, T, D)      alpha-weighted x
    # outf_ref   : VMEM (bb, T, F)      raw linear output, UNPADDED feature dim
    # alpha_ref  : VMEM (1, bb, T)      attention weights (lane-dense rows)
    bb, t, d = x_ref.shape
    fp = w_ref.shape[1]
    f = outf_ref.shape[2]

    x = x_ref[...]                                      # (bb, T, D)
    w = w_ref[...]                                      # (D, Fp)
    b = b_ref[...]                                      # (1, Fp) f32

    # One tall MXU matmul over all bb*T rows (leading-dim retiling is free).
    x2 = x.reshape(bb * t, d)
    of2 = jnp.dot(x2, w, preferred_element_type=jnp.float32) + b   # (bb*T, Fp) f32
    of3 = of2.reshape(bb, t, fp)                                    # (bb, T, Fp)

    # Only the first F feature columns go back to HBM.
    outf_ref[...] = of3[:, :, :f].astype(outf_ref.dtype)

    # Per-row L2 norm over the (zero-padded) feature axis, in f32.
    norms = jnp.sqrt(jnp.sum(of3 * of3, axis=2, keepdims=True))     # (bb, T, 1)

    # Normalize over the seq axis (exact division: values feed the relu
    # threshold), threshold, then renormalize (approx EUP reciprocal is fine).
    a = norms / jnp.sum(norms, axis=1, keepdims=True)                # (bb, T, 1)
    a = jnp.maximum(a - thresh_ref[0], 0.0)
    inv2 = pl.reciprocal(jnp.sum(a, axis=1, keepdims=True), approx=True)
    a = a * inv2

    out_ref[...] = (a * x).astype(out_ref.dtype)                     # (bb, T, D)
    alpha_ref[0] = jnp.squeeze(a, axis=2).astype(alpha_ref.dtype)    # (bb, T)


def attention_layer(x, w, bias, gamma, *, block_batch=None, vmem_budget_bytes=None):
    """Pallas equivalent of Attention_Layer.forward(x, w, bias, gamma).

    x    : (B, T, D)
    w    : (F, D)   (torch nn.Linear layout)
    bias : (F,)
    Returns (out, out_f, alpha_01):
      out      : (B, T, D)
      out_f    : (B*T, F)
      alpha_01 : (B, T)
    """
    B, T, D = x.shape
    F_out = w.shape[0]
    Fp = _round_up(F_out, 128)

    cores, default_vmem = _tpu_generation_info()
    if vmem_budget_bytes is None:
        vmem_budget_bytes = default_vmem
    vmem_budget_bytes = int(vmem_budget_bytes)

    # Wrapper-side layout plumbing: weight transposed to (D, Fp) in x.dtype
    # (halves the weight DMA for bf16 callers), bias padded in f32 (tiny).
    # jnp.pad guarantees the padded columns are exactly zero, which the
    # in-kernel norm-over-Fp relies on.
    w_df = jnp.pad(jnp.transpose(w).astype(x.dtype), ((0, 0), (0, Fp - F_out)))
    b_pad = jnp.pad(bias.astype(jnp.float32), (0, Fp - F_out)).reshape(1, Fp)
    thresh = jnp.asarray([0.1 / float(gamma)], dtype=jnp.float32)

    # --- choose how many batches to process per grid step -------------------
    xb = jnp.dtype(x.dtype).itemsize
    if block_batch is None:
        # Double-buffered pipelined blocks: x, out, out_f, alpha ...
        per_b = 2 * (2 * T * D * xb + T * F_out * xb + T * 4)
        # ... plus in-kernel f32 intermediates (padded matmul result, a*x).
        per_b += T * Fp * 4 + T * D * 4
        # Weight + bias (assume 2 buffers in case Buffered(1) falls back),
        # plus Mosaic internal-scratch headroom.
        fixed = 2 * (D * Fp * xb + Fp * 4) + 2 * 1024 * 1024
        usable = int(vmem_budget_bytes * 0.75)
        bb = max(1, (usable - fixed) // per_b)
        bb = min(bb, B)
    else:
        bb = max(1, min(int(block_batch), B))

    # Keep enough grid steps per TensorCore (>=3) so the auto-pipeline
    # overlaps DMA with compute; on dual-core parts the "parallel" axis is
    # sharded, so require ~2x as many steps.
    target_steps = min(3 * cores, B)
    if target_steps > 1:
        bb = min(bb, max(1, B // target_steps))
    bb = int(bb)

    G = -(-B // bb)                      # number of grid steps
    B_pad = G * bb
    x_in = jnp.pad(x, ((0, B_pad - B), (0, 0), (0, 0))) if B_pad != B else x

    def _build(use_buffered):
        inv_kwargs = {}
        if use_buffered and hasattr(pl, "Buffered"):
            # Weight/bias index_maps are constant -> single buffer is enough.
            inv_kwargs = dict(pipeline_mode=pl.Buffered(1))
        in_specs = [
            pl.BlockSpec(memory_space=pltpu.MemorySpace.SMEM),           # thresh
            pl.BlockSpec((bb, T, D), lambda i: (i, 0, 0)),               # x
            pl.BlockSpec((D, Fp), lambda i: (0, 0), **inv_kwargs),       # w (D,Fp)
            pl.BlockSpec((1, Fp), lambda i: (0, 0), **inv_kwargs),       # bias
        ]
        out_specs = (
            pl.BlockSpec((bb, T, D), lambda i: (i, 0, 0)),               # out
            pl.BlockSpec((bb, T, F_out), lambda i: (i, 0, 0)),           # out_f (unpadded)
            pl.BlockSpec((1, bb, T), lambda i: (i, 0, 0)),               # alpha
        )
        return pl.pallas_call(
            _attn_kernel,
            out_shape=(
                jax.ShapeDtypeStruct((B_pad, T, D), x.dtype),
                jax.ShapeDtypeStruct((B_pad, T, F_out), x.dtype),
                jax.ShapeDtypeStruct((G, bb, T), jnp.float32),
            ),
            grid=(G,),
            in_specs=in_specs,
            out_specs=out_specs,
            compiler_params=pltpu.CompilerParams(
                dimension_semantics=("parallel",),
                vmem_limit_bytes=vmem_budget_bytes),
        )

    try:
        out_full, outf_full, alpha_full = _build(True)(thresh, x_in, w_df, b_pad)
    except Exception:
        # This JAX/Mosaic version rejected Buffered(1); use default 2-deep.
        out_full, outf_full, alpha_full = _build(False)(thresh, x_in, w_df, b_pad)

    out = out_full if B_pad == B else out_full[:B]
    outf = outf_full if B_pad == B else outf_full[:B]
    out_f = outf.reshape(B * T, F_out)
    alpha = alpha_full.reshape(B_pad, T)
    if B_pad != B:
        alpha = alpha[:B]
    return out, out_f, alpha


if __name__ == "__main__":
    key = jax.random.PRNGKey(0)
    kx, kw, kb = jax.random.split(key, 3)

    B, T, D, F_out = 4, 8, 32, 16
    x = jax.random.normal(kx, (B, T, D), dtype=jnp.float32)
    w = 0.1 * jax.random.normal(kw, (F_out, D), dtype=jnp.float32)
    bias = 0.1 * jax.random.normal(kb, (F_out,), dtype=jnp.float32)
    gamma = 2.0

    out, out_f, alpha = attention_layer(x, w, bias, gamma)
    jax.block_until_ready((out, out_f, alpha))

    # pure-JAX reference
    of_ref = x.reshape(B * T, D) @ w.T + bias
    n_ref = jnp.sqrt(jnp.sum(of_ref.reshape(B, T, F_out) ** 2, axis=2))
    a_ref = n_ref / jnp.sum(n_ref, axis=1, keepdims=True)
    a_ref = jnp.maximum(a_ref - 0.1 / gamma, 0.0)
    a_ref = a_ref / jnp.sum(a_ref, axis=1, keepdims=True)
    o_ref = a_ref[..., None] * x

    assert out.shape == (B, T, D)
    assert out_f.shape == (B * T, F_out)
    assert alpha.shape == (B, T)
    assert jnp.allclose(out_f, of_ref, atol=2e-4, rtol=2e-4)
    # final renormalization goes through the approx (EUP) reciprocal -> looser tol
    assert jnp.allclose(alpha, a_ref, atol=2e-3, rtol=2e-3)
    assert jnp.allclose(out, o_ref, atol=2e-3, rtol=2e-3)

    print("KERNEL_OK")
</pallas_src>

<mosaic_0001>
module attributes {stable_mosaic.version = 11 : i64} {
  func.func @_attn_kernel(%arg0: i32, %arg1: memref<1xf32, #tpu.memory_space<smem>>, %arg2: memref<1x8x32xf32, #tpu.memory_space<vmem>>, %arg3: memref<32x128xf32, #tpu.memory_space<vmem>>, %arg4: memref<1x128xf32, #tpu.memory_space<vmem>>, %arg5: memref<1x8x32xf32, #tpu.memory_space<vmem>>, %arg6: memref<1x8x16xf32, #tpu.memory_space<vmem>>, %arg7: memref<1x1x8xf32, #tpu.memory_space<vmem>>) attributes {dimension_semantics = [#tpu.dimension_semantics<parallel>], iteration_bounds = array<i64: 4>, scalar_prefetch = 0 : i64, scratch_operands = 0 : i64, tpu.core_type = #tpu.core_type<tc>, window_params = [{transform_indices = @transform_0, window_bounds = array<i64: 1>}, {transform_indices = @transform_1, window_bounds = array<i64: 1, 8, 32>}, {pipeline_mode = #tpu.pipeline_mode<synchronous>, transform_indices = @transform_2, window_bounds = array<i64: 32, 128>}, {pipeline_mode = #tpu.pipeline_mode<synchronous>, transform_indices = @transform_3, window_bounds = array<i64: 1, 128>}, {transform_indices = @transform_4, window_bounds = array<i64: 1, 8, 32>}, {transform_indices = @transform_5, window_bounds = array<i64: 1, 8, 16>}, {transform_indices = @transform_6, window_bounds = array<i64: 1, 1, 8>}]} {
    %c0 = arith.constant 0 : index
    %c0_0 = arith.constant 0 : index
    %c0_1 = arith.constant 0 : index
    %0 = vector.load %arg2[%c0, %c0_0, %c0_1] : memref<1x8x32xf32, #tpu.memory_space<vmem>>, vector<1x8x32xf32>
    %c0_2 = arith.constant 0 : index
    %c0_3 = arith.constant 0 : index
    %1 = vector.load %arg3[%c0_2, %c0_3] : memref<32x128xf32, #tpu.memory_space<vmem>>, vector<32x128xf32>
    %c0_4 = arith.constant 0 : index
    %c0_5 = arith.constant 0 : index
    %2 = vector.load %arg4[%c0_4, %c0_5] : memref<1x128xf32, #tpu.memory_space<vmem>>, vector<1x128xf32>
    %3 = vector.shape_cast %0 : vector<1x8x32xf32> to vector<8x32xf32>
    %cst = arith.constant dense<0.000000e+00> : vector<8x128xf32>
    %4 = tpu.matmul %3, %1, %cst {dimension_numbers = #tpu.dot_dimension_numbers<[1], [0], [0], [1], [0, 0, 1, 1], [], []>} : vector<8x32xf32>, vector<32x128xf32>, vector<8x128xf32> -> vector<8x128xf32>
    %5 = vector.broadcast %2 : vector<1x128xf32> to vector<8x128xf32>
    %6 = arith.addf %4, %5 : vector<8x128xf32>
    %7 = vector.shape_cast %6 : vector<8x128xf32> to vector<1x8x128xf32>
    %8 = vector.extract_strided_slice %7 {offsets = [0, 0, 0], sizes = [1, 8, 16], strides = [1, 1, 1]} : vector<1x8x128xf32> to vector<1x8x16xf32>
    %c0_6 = arith.constant 0 : index
    %c0_7 = arith.constant 0 : index
    %c0_8 = arith.constant 0 : index
    %9 = vector.load %arg6[%c0_6, %c0_7, %c0_8] : memref<1x8x16xf32, #tpu.memory_space<vmem>>, vector<1x8x16xf32>
    tpu.vector_store %arg6[%c0_6, %c0_7, %c0_8], %8 {strides = array<i32>} : memref<1x8x16xf32, #tpu.memory_space<vmem>>, vector<1x8x16xf32>,
    %10 = arith.mulf %7, %7 : vector<1x8x128xf32>
    %cst_9 = arith.constant dense<0.000000e+00> : vector<1x8xf32>
    %11 = vector.multi_reduction <add>, %10, %cst_9 [2] : vector<1x8x128xf32> to vector<1x8xf32>
    %12 = vector.shape_cast %11 : vector<1x8xf32> to vector<1x8x1xf32>
    %13 = math.sqrt %12 : vector<1x8x1xf32>
    %cst_10 = arith.constant dense<0.000000e+00> : vector<1x1xf32>
    %14 = vector.multi_reduction <add>, %13, %cst_10 [1] : vector<1x8x1xf32> to vector<1x1xf32>
    %15 = vector.shape_cast %14 : vector<1x1xf32> to vector<1x1x1xf32>
    %16 = vector.broadcast %15 : vector<1x1x1xf32> to vector<1x8x1xf32>
    %17 = arith.divf %13, %16 : vector<1x8x1xf32>
    %c0_11 = arith.constant 0 : index
    %18 = memref.load %arg1[%c0_11] : memref<1xf32, #tpu.memory_space<smem>>
    %19 = vector.broadcast %18 : f32 to vector<1x8x1xf32>
    %20 = arith.subf %17, %19 : vector<1x8x1xf32>
    %cst_12 = arith.constant 0.000000e+00 : f32
    %21 = vector.broadcast %cst_12 : f32 to vector<1x8x1xf32>
    %22 = arith.maximumf %20, %21 : vector<1x8x1xf32>
    %cst_13 = arith.constant dense<0.000000e+00> : vector<1x1xf32>
    %23 = vector.multi_reduction <add>, %22, %cst_13 [1] : vector<1x8x1xf32> to vector<1x1xf32>
    %24 = vector.shape_cast %23 : vector<1x1xf32> to vector<1x1x1xf32>
    %25 = tpu.reciprocal %24 {approx = true} : vector<1x1x1xf32> -> vector<1x1x1xf32>
    %26 = vector.broadcast %25 : vector<1x1x1xf32> to vector<1x8x1xf32>
    %27 = arith.mulf %22, %26 : vector<1x8x1xf32>
    %28 = vector.broadcast %27 : vector<1x8x1xf32> to vector<1x8x32xf32>
    %29 = arith.mulf %28, %0 : vector<1x8x32xf32>
    %c0_14 = arith.constant 0 : index
    %c0_15 = arith.constant 0 : index
    %c0_16 = arith.constant 0 : index
    %30 = vector.load %arg5[%c0_14, %c0_15, %c0_16] : memref<1x8x32xf32, #tpu.memory_space<vmem>>, vector<1x8x32xf32>
    tpu.vector_store %arg5[%c0_14, %c0_15, %c0_16], %29 {strides = array<i32>} : memref<1x8x32xf32, #tpu.memory_space<vmem>>, vector<1x8x32xf32>,
    %31 = vector.shape_cast %27 : vector<1x8x1xf32> to vector<1x8xf32>
    %c0_17 = arith.constant 0 : index
    %c0_18 = arith.constant 0 : index
    %c0_19 = arith.constant 0 : index
    %32 = vector.load %arg7[%c0_17, %c0_18, %c0_19] : memref<1x1x8xf32, #tpu.memory_space<vmem>>, vector<1x1x8xf32>
    %33 = vector.shape_cast %32 : vector<1x1x8xf32> to vector<1x8xf32>
    %34 = vector.shape_cast %31 : vector<1x8xf32> to vector<1x1x8xf32>
    tpu.vector_store %arg7[%c0_17, %c0_18, %c0_19], %34 {strides = array<i32>} : memref<1x1x8xf32, #tpu.memory_space<vmem>>, vector<1x1x8xf32>,
    return
  }
  func.func @transform_0(%arg0: i32) -> i32 {
    %c0_i32 = arith.constant 0 : i32
    %c0_i32_0 = arith.constant 0 : i32
    return %c0_i32 : i32
  }
  func.func @transform_1(%arg0: i32) -> (i32, i32, i32) {
    %c0_i32 = arith.constant 0 : i32
    %c0_i32_0 = arith.constant 0 : i32
    %c0_i32_1 = arith.constant 0 : i32
    return %arg0, %c0_i32, %c0_i32_0 : i32, i32, i32
  }
  func.func @transform_2(%arg0: i32) -> (i32, i32) {
    %c0_i32 = arith.constant 0 : i32
    %c0_i32_0 = arith.constant 0 : i32
    %c0_i32_1 = arith.constant 0 : i32
    return %c0_i32, %c0_i32_0 : i32, i32
  }
  func.func @transform_3(%arg0: i32) -> (i32, i32) {
    %c0_i32 = arith.constant 0 : i32
    %c0_i32_0 = arith.constant 0 : i32
    %c0_i32_1 = arith.constant 0 : i32
    return %c0_i32, %c0_i32_0 : i32, i32
  }
  func.func @transform_4(%arg0: i32) -> (i32, i32, i32) {
    %c0_i32 = arith.constant 0 : i32
    %c0_i32_0 = arith.constant 0 : i32
    %c0_i32_1 = arith.constant 0 : i32
    return %arg0, %c0_i32, %c0_i32_0 : i32, i32, i32
  }
  func.func @transform_5(%arg0: i32) -> (i32, i32, i32) {
    %c0_i32 = arith.constant 0 : i32
    %c0_i32_0 = arith.constant 0 : i32
    %c0_i32_1 = arith.constant 0 : i32
    return %arg0, %c0_i32, %c0_i32_0 : i32, i32, i32
  }
  func.func @transform_6(%arg0: i32) -> (i32, i32, i32) {
    %c0_i32 = arith.constant 0 : i32
    %c0_i32_0 = arith.constant 0 : i32
    %c0_i32_1 = arith.constant 0 : i32
    return %arg0, %c0_i32, %c0_i32_0 : i32, i32, i32
  }
}

module attributes {stable_mosaic.version = 11 : i64} {
  func.func @_attn_kernel(%arg0: i32, %arg1: memref<1xf32, #tpu.memory_space<smem>>, %arg2: memref<1x8x32xf32, #tpu.memory_space<vmem>>, %arg3: memref<32x128xf32, #tpu.memory_space<vmem>>, %arg4: memref<1x128xf32, #tpu.memory_space<vmem>>, %arg5: memref<1x8x32xf32, #tpu.memory_space<vmem>>, %arg6: memref<1x8x16xf32, #tpu.memory_space<vmem>>, %arg7: memref<1x1x8xf32, #tpu.memory_space<vmem>>) attributes {dimension_semantics = [#tpu.dimension_semantics<parallel>], iteration_bounds = array<i64: 4>, scalar_prefetch = 0 : i64, scratch_operands = 0 : i64, tpu.core_type = #tpu.core_type<tc>, window_params = [{transform_indices = @transform_0, window_bounds = array<i64: 1>}, {transform_indices = @transform_1, window_bounds = array<i64: 1, 8, 32>}, {pipeline_mode = #tpu.pipeline_mode<synchronous>, transform_indices = @transform_2, window_bounds = array<i64: 32, 128>}, {pipeline_mode = #tpu.pipeline_mode<synchronous>, transform_indices = @transform_3, window_bounds = array<i64: 1, 128>}, {transform_indices = @transform_4, window_bounds = array<i64: 1, 8, 32>}, {transform_indices = @transform_5, window_bounds = array<i64: 1, 8, 16>}, {transform_indices = @transform_6, window_bounds = array<i64: 1, 1, 8>}]} {
    %c0 = arith.constant 0 : index
    %c0_0 = arith.constant 0 : index
    %c0_1 = arith.constant 0 : index
    %0 = vector.load %arg2[%c0, %c0_0, %c0_1] : memref<1x8x32xf32, #tpu.memory_space<vmem>>, vector<1x8x32xf32>
    %c0_2 = arith.constant 0 : index
    %c0_3 = arith.constant 0 : index
    %1 = vector.load %arg3[%c0_2, %c0_3] : memref<32x128xf32, #tpu.memory_space<vmem>>, vector<32x128xf32>
    %c0_4 = arith.constant 0 : index
    %c0_5 = arith.constant 0 : index
    %2 = vector.load %arg4[%c0_4, %c0_5] : memref<1x128xf32, #tpu.memory_space<vmem>>, vector<1x128xf32>
    %3 = vector.shape_cast %0 : vector<1x8x32xf32> to vector<8x32xf32>
    %cst = arith.constant dense<0.000000e+00> : vector<8x128xf32>
    %4 = tpu.matmul %3, %1, %cst {dimension_numbers = #tpu.dot_dimension_numbers<[1], [0], [0], [1], [0, 0, 1, 1], [], []>} : vector<8x32xf32>, vector<32x128xf32>, vector<8x128xf32> -> vector<8x128xf32>
    %5 = vector.broadcast %2 : vector<1x128xf32> to vector<8x128xf32>
    %6 = arith.addf %4, %5 : vector<8x128xf32>
    %7 = vector.shape_cast %6 : vector<8x128xf32> to vector<1x8x128xf32>
    %8 = vector.extract_strided_slice %7 {offsets = [0, 0, 0], sizes = [1, 8, 16], strides = [1, 1, 1]} : vector<1x8x128xf32> to vector<1x8x16xf32>
    %c0_6 = arith.constant 0 : index
    %c0_7 = arith.constant 0 : index
    %c0_8 = arith.constant 0 : index
    %9 = vector.load %arg6[%c0_6, %c0_7, %c0_8] : memref<1x8x16xf32, #tpu.memory_space<vmem>>, vector<1x8x16xf32>
    tpu.vector_store %arg6[%c0_6, %c0_7, %c0_8], %8 {strides = array<i32>} : memref<1x8x16xf32, #tpu.memory_space<vmem>>, vector<1x8x16xf32>,
    %10 = arith.mulf %7, %7 : vector<1x8x128xf32>
    %cst_9 = arith.constant dense<0.000000e+00> : vector<1x8xf32>
    %11 = vector.multi_reduction <add>, %10, %cst_9 [2] : vector<1x8x128xf32> to vector<1x8xf32>
    %12 = vector.shape_cast %11 : vector<1x8xf32> to vector<1x8x1xf32>
    %13 = math.sqrt %12 : vector<1x8x1xf32>
    %cst_10 = arith.constant dense<0.000000e+00> : vector<1x1xf32>
    %14 = vector.multi_reduction <add>, %13, %cst_10 [1] : vector<1x8x1xf32> to vector<1x1xf32>
    %15 = vector.shape_cast %14 : vector<1x1xf32> to vector<1x1x1xf32>
    %16 = vector.broadcast %15 : vector<1x1x1xf32> to vector<1x8x1xf32>
    %17 = arith.divf %13, %16 : vector<1x8x1xf32>
    %c0_11 = arith.constant 0 : index
    %18 = memref.load %arg1[%c0_11] : memref<1xf32, #tpu.memory_space<smem>>
    %19 = vector.broadcast %18 : f32 to vector<1x8x1xf32>
    %20 = arith.subf %17, %19 : vector<1x8x1xf32>
    %cst_12 = arith.constant 0.000000e+00 : f32
    %21 = vector.broadcast %cst_12 : f32 to vector<1x8x1xf32>
    %22 = arith.maximumf %20, %21 : vector<1x8x1xf32>
    %cst_13 = arith.constant dense<0.000000e+00> : vector<1x1xf32>
    %23 = vector.multi_reduction <add>, %22, %cst_13 [1] : vector<1x8x1xf32> to vector<1x1xf32>
    %24 = vector.shape_cast %23 : vector<1x1xf32> to vector<1x1x1xf32>
    %25 = tpu.reciprocal %24 {approx = true} : vector<1x1x1xf32> -> vector<1x1x1xf32>
    %26 = vector.broadcast %25 : vector<1x1x1xf32> to vector<1x8x1xf32>
    %27 = arith.mulf %22, %26 : vector<1x8x1xf32>
    %28 = vector.broadcast %27 : vector<1x8x1xf32> to vector<1x8x32xf32>
    %29 = arith.mulf %28, %0 : vector<1x8x32xf32>
    %c0_14 = arith.constant 0 : index
    %c0_15 = arith.constant 0 : index
    %c0_16 = arith.constant 0 : index
    %30 = vector.load %arg5[%c0_14, %c0_15, %c0_16] : memref<1x8x32xf32, #tpu.memory_space<vmem>>, vector<1x8x32xf32>
    tpu.vector_store %arg5[%c0_14, %c0_15, %c0_16], %29 {strides = array<i32>} : memref<1x8x32xf32, #tpu.memory_space<vmem>>, vector<1x8x32xf32>,
    %31 = vector.shape_cast %27 : vector<1x8x1xf32> to vector<1x8xf32>
    %c0_17 = arith.constant 0 : index
    %c0_18 = arith.constant 0 : index
    %c0_19 = arith.constant 0 : index
    %32 = vector.load %arg7[%c0_17, %c0_18, %c0_19] : memref<1x1x8xf32, #tpu.memory_space<vmem>>, vector<1x1x8xf32>
    %33 = vector.shape_cast %32 : vector<1x1x8xf32> to vector<1x8xf32>
    %34 = vector.shape_cast %31 : vector<1x8xf32> to vector<1x1x8xf32>
    tpu.vector_store %arg7[%c0_17, %c0_18, %c0_19], %34 {strides = array<i32>} : memref<1x1x8xf32, #tpu.memory_space<vmem>>, vector<1x1x8xf32>,
    return
  }
  func.func @transform_0(%arg0: i32) -> i32 {
    %c0_i32 = arith.constant 0 : i32
    %c0_i32_0 = arith.constant 0 : i32
    return %c0_i32 : i32
  }
  func.func @transform_1(%arg0: i32) -> (i32, i32, i32) {
    %c0_i32 = arith.constant 0 : i32
    %c0_i32_0 = arith.constant 0 : i32
    %c0_i32_1 = arith.constant 0 : i32
    return %arg0, %c0_i32, %c0_i32_0 : i32, i32, i32
  }
  func.func @transform_2(%arg0: i32) -> (i32, i32) {
    %c0_i32 = arith.constant 0 : i32
    %c0_i32_0 = arith.constant 0 : i32
    %c0_i32_1 = arith.constant 0 : i32
    return %c0_i32, %c0_i32_0 : i32, i32
  }
  func.func @transform_3(%arg0: i32) -> (i32, i32) {
    %c0_i32 = arith.constant 0 : i32
    %c0_i32_0 = arith.constant 0 : i32
    %c0_i32_1 = arith.constant 0 : i32
    return %c0_i32, %c0_i32_0 : i32, i32
  }
  func.func @transform_4(%arg0: i32) -> (i32, i32, i32) {
    %c0_i32 = arith.constant 0 : i32
    %c0_i32_0 = arith.constant 0 : i32
    %c0_i32_1 = arith.constant 0 : i32
    return %arg0, %c0_i32, %c0_i32_0 : i32, i32, i32
  }
  func.func @transform_5(%arg0: i32) -> (i32, i32, i32) {
    %c0_i32 = arith.constant 0 : i32
    %c0_i32_0 = arith.constant 0 : i32
    %c0_i32_1 = arith.constant 0 : i32
    return %arg0, %c0_i32, %c0_i32_0 : i32, i32, i32
  }
  func.func @transform_6(%arg0: i32) -> (i32, i32, i32) {
    %c0_i32 = arith.constant 0 : i32
    %c0_i32_0 = arith.constant 0 : i32
    %c0_i32_1 = arith.constant 0 : i32
    return %arg0, %c0_i32, %c0_i32_0 : i32, i32, i32
  }
}

</mosaic_0001>

<bundles_post_ra>
// kernel: tpu_custom_call.1
= control target key start
LH: loop header
LB: loop body
LE: loop exit
PB: predicated region body
PF: predicated region fallthrough
CT: control target
= control target key end

     0   :  { %s1333_s0 = inlined_call_operand.<no memory space> [shape: f32[1], index: 0, kind: input, shape index: {}]   ;;  %s1334_s1 = inlined_call_operand.hbm [shape: f32[4,8,32], index: 1, kind: input, shape index: {}]   ;;  %s1335_s2 = inlined_call_operand.hbm [shape: f32[32,128], index: 2, kind: input, shape index: {}]   ;;  %s1336_s3 = inlined_call_operand.hbm [shape: f32[1,128], index: 3, kind: input, shape index: {}]   ;;  %s1337_s4 = inlined_call_operand.hbm [shape: f32[4,8,32], index: 4, kind: output, shape index: {0}]   ;;  %s1338_s5 = inlined_call_operand.hbm [shape: f32[4,8,16], index: 5, kind: output, shape index: {1}]   ;;  %s1339_s6 = inlined_call_operand.hbm [shape: f32[4,1,8], index: 6, kind: output, shape index: {2}]  }
   0x1   :  { %12 = sst [smem:[#allocation2]] %s1333_s0 }
   0x2   :  { %13 = vsyncpa [#allocation4], 0 }
   0x3   :  { %15 = vsyncpa [#allocation4 + $0x1], 0 }
   0x4   :  { %16 = vsyncpa [#allocation7], 0 }
   0x5   :  { %17 = vsyncpa [#allocation5], 0 }
   0x6   :  { %19 = vsyncpa [#allocation5 + $0x1], 0 }
   0x7   :  { %20 = vsyncpa [#allocation11], 0 }
   0x8   :  { %22 = vsyncpa [#allocation11 + $0x1], 0  ;;  %s1036_s23 = smov 0   ;;  %s1038_s24 = smov 0  }
   0x9   :  { %s1040_s25 = smov 0   ;;  %s1042_s26 = smov 0  }
   0xa LB: > { %s1057_s0 = sadd.s32 4294967295, %s985_s26   ;;  %s637_s27 = sadd.s32 4294967294, %s985_s26   ;;  %s985_s26 = sphi %s1042_s26, %s1358_s26   ;;  %s981_s25 = sphi %s1040_s25, %s1357_s25   ;;  %s977_s24 = sphi %s1038_s24, %s1356_s24   ;;  %s973_s23 = sphi %s1036_s23, %s1355_s23  }
   0xb   : > { %p69_p0 = scmp.ne.s32.totalorder %s977_s24, %s973_s23  ;;  %p1340_p1 = scmp.eq.s32.totalorder %s1057_s0, 0 }
   0xc   : > { %p141_p3 = scmp.eq.s32.totalorder %s637_s27, 3  ;;  %p638_p5 = scmp.ge.s32.totalorder %s985_s26, 1 }
   0xd   : > { %p1068_p4 = por %p1340_p1, %p69_p0  ;;  %p200_p7 = scmp.lt.s32.totalorder %s985_s26, 5 }
   0xe   : > { %p1073_p6 = por %p141_p3, %p69_p0  ;;  %s987_s7 = smov [#allocation6]  }
   0xf   : > { %s1343_s28 = scalar_select %p1068_p4, 1, 0 }
  0x10   : > { %s1344_s29 = scalar_select %p1073_p6, 1, 0 }
  0x11   : > { %p1078_p8 = pnand %p638_p5, %p200_p7  ;;  %s215_s8 = sshll.u32 %s987_s7, 4  ;;  %s216_s8 = int_to_ptr.vmem [resolvable:$true] %s215_s8 }
  0x12   : > { %s988_s10 = smov [#allocation8]   ;;  %s769_s14 = scalar_lea.hbm %s1335_s2, 512 }
  0x13   : > { %s1345_s30 = scalar_select %p1078_p8, 1, 0 }
  0x14   : > { %p697_p9 = pneg %p1078_p8  ;;  %s229_s11 = sshll.u32 %s988_s10, 4  ;;  %s1090_s11 = int_to_ptr.vmem [resolvable:$true] %s229_s11 }
  0x15   : > { %p770_p11 = scmp.ne.s32.totalorder %s1335_s2, %s769_s14  ;;  %p776_p3 = scmp.lt.u32.totalorder %s769_s14, %s1335_s2 }
  0x16   : > { %p1086_p10 = pnand %p697_p9, %p1340_p1 }
  0x18   : > { %p771_p12 = pneg %p1086_p10 }
  0x1a   : > { %p772_p13 = pnand %p771_p12, %p770_p11 }
  0x1c   : > { %p773_p0 = pneg %p772_p13 }
  0x1e   : > { %p778_p5 = pnand %p776_p3, %p773_p0 }
  0x20   : > { %781 = shalt.err (!%p778_p5)
}
  0x21   : > { %s782_s19 = scalar_lea.vmem %s216_s8, 512  ;;  %p790_p2 = scmp.lt.s32.totalorder %s216_s8, %s216_s8 }
  0x22   : > { %p783_p7 = scmp.ne.s32.totalorder %s216_s8, %s782_s19  ;;  %p791_p6 = scmp.lt.s32.totalorder %s782_s19, %s782_s19 }
  0x24   : > { %p785_p9 = pnand %p783_p7, %p771_p12  ;;  %p792_p4 = por %p791_p6, %p790_p2 }
  0x26   : > { %p786_p1 = pneg %p785_p9 }
  0x28   : > { %p793_p8 = pnand %p792_p4, %p786_p1 }
  0x2a   : > { %796 = shalt.err (!%p793_p8)
}
  0x2b   : > { %s989_s20 = smov 128   ;;  %s990_s21 = smov 8  }
  0x2c   : > { %700 = dma.hbm_to_vmem [thread:$0]  (!%p1086_p10), %s1335_s2, 512, %s216_s8, [#allocation7], %s989_s20, %s989_s20, %s990_s21  }
  0x2d   : > { %s797_s13 = scalar_lea.hbm %s1336_s3, 16 }
  0x2e   : > { %p798_p11 = scmp.ne.s32.totalorder %s1336_s3, %s797_s13  ;;  %p804_p4 = scmp.lt.u32.totalorder %s797_s13, %s1336_s3 }
  0x30   : > { %p800_p1 = pnand %p798_p11, %p771_p12 }
  0x32   : > { %p801_p2 = pneg %p800_p1 }
  0x34   : > { %p806_p6 = pnand %p804_p4, %p801_p2 }
  0x36   : > { %809 = shalt.err (!%p806_p6)
}
  0x37   : > { %s810_s8 = scalar_lea.vmem %s1090_s11, 16  ;;  %s817_s18 = scalar_lea.vmem %s1090_s11, 32 }
  0x38   : > { %p811_p8 = scmp.ne.s32.totalorder %s1090_s11, %s810_s8  ;;  %p818_p3 = scmp.lt.s32.totalorder %s1090_s11, %s1090_s11 }
  0x39   : > { %p819_p5 = scmp.lt.s32.totalorder %s817_s18, %s810_s8 }
  0x3a   : > { %p813_p13 = pnand %p811_p8, %p771_p12 }
  0x3b   : > { %p820_p7 = por %p819_p5, %p818_p3 }
  0x3c   : > { %p814_p0 = pneg %p813_p13 }
  0x3e   : > { %p821_p9 = pnand %p820_p7, %p814_p0 }
  0x40   : > { %824 = shalt.err (!%p821_p9)
}
  0x41   : > { %703 = dma.hbm_to_vmem [thread:$0]  (!%p1086_p10), %s1336_s3, 16, %s1090_s11, [#allocation7]  }
  0x42   : > { %s1141_s21 = sadd.s32 1, %s985_s26   ;;  %s56_s9 = sadd.s32 1, %s981_s25 }
  0x43   : > { %s53_s22 = ssub.s32 %s985_s26, %s1141_s21  ;;  %p63_p12 = scmp.ne.s32.totalorder %s981_s25, %s977_s24 }
  0x44   : > { %p54_p11 = scmp.eq.s32.totalorder %s53_s22, 0  ;;  %p64_p1 = scmp.eq.s32.totalorder %s985_s26, 0 }
  0x45   : > { %p1347_p2 = scmp.eq.s32.totalorder %s1057_s0, 3  ;;  %p720_p6 = scmp.lt.s32.totalorder %s985_s26, 4 }
  0x46   : > { %s1157_s10 = scalar_select %p54_p11, %s981_s25, %s56_s9  }
  0x47   : > { %p1151_p4 = por %p1347_p2, %p63_p12  ;;  %p65_p8 = por %p64_p1, %p63_p12 }
  0x48   : > { %s240_s12 = sand.u32 1, %s981_s25   ;;  %s643_s11 = sshll.u32 %s985_s26, 7 }
  0x49   : > { %s642_s13 = sshll.u32 %s240_s12, 3  ;;  %s1164_s16 = scalar_lea.hbm %s1334_s1, %s643_s11 }
  0x4a   : > { %s244_s17 = scalar_lea.vmem [#allocation3], %s642_s13  ;;  %p1168_p10 = pnand %p720_p6, %p65_p8 }
  0x4b   : > { %s251_s8 = sshll.u32 %s244_s17, 4  ;;  %s241_s19 = scalar_lea.sflag [#allocation4], %s240_s12  ;;  %s1166_s8 = int_to_ptr.vmem [resolvable:$true] %s251_s8 }
  0x4c   : > { %s825_s20 = scalar_lea.hbm %s1164_s16, 128  ;;  %p827_p0 = pneg %p1168_p10 }
  0x4d   : > { %p826_p13 = scmp.ne.s32.totalorder %s1164_s16, %s825_s20  ;;  %s830_s13 = scalar_lea.hbm %s1334_s1, 512 }
  0x4e   : > { %p831_p7 = scmp.lt.u32.totalorder %s1164_s16, %s1334_s1  ;;  %p832_p9 = scmp.lt.u32.totalorder %s830_s13, %s825_s20 }
  0x4f   : > { %p828_p3 = pnand %p827_p0, %p826_p13  ;;  %p834_p11 = scmp.lt.u32.totalorder %s825_s20, %s1164_s16 }
  0x50   : > { %p833_p12 = por %p832_p9, %p831_p7 }
  0x51   : > { %p829_p5 = pneg %p828_p3 }
  0x52   : > { %p835_p1 = por %p834_p11, %p833_p12 }
  0x54   : > { %p836_p2 = pnand %p835_p1, %p829_p5 }
  0x56   : > { %839 = shalt.err (!%p836_p2)
}
  0x57   : > { %s840_s12 = scalar_lea.vmem %s1166_s8, 128  ;;  %s991_s15 = smov [#allocation3]  }
  0x58   : > { %p841_p6 = scmp.ne.s32.totalorder %s1166_s8, %s840_s12  ;;  %s845_s17 = sshll.u32 %s991_s15, 4  ;;  %s846_s17 = int_to_ptr.vmem [resolvable:$false] %s845_s17 }
  0x59   : > { %s847_s9 = scalar_lea.vmem %s846_s17, 256  ;;  %p848_p3 = scmp.lt.s32.totalorder %s1166_s8, %s846_s17 }
  0x5a   : > { %p843_p8 = pnand %p841_p6, %p827_p0  ;;  %p849_p7 = scmp.lt.s32.totalorder %s847_s9, %s840_s12 }
  0x5c   : > { %p844_p13 = pneg %p843_p8  ;;  %p850_p9 = por %p849_p7, %p848_p3 }
  0x5e   : > { %p851_p12 = pnand %p850_p9, %p844_p13 }
  0x60   : > { %854 = shalt.err (!%p851_p12)
}
  0x61   : > { %707 = dma.hbm_to_vmem [thread:$0]  (!%p1168_p10), %s1164_s16, 128, %s1166_s8, %s241_s19  }
  0x62   : > { %p1350_p5 = scmp.ne.s32.totalorder %s1345_s30, 0 }
  0x63   : > { %s1200_s20 = sand.u32 (!%p1350_p5), 1, %s977_s24   ;;  %p1351_p0 = scmp.ne.s32.totalorder (!%p1350_p5), %s1343_s28, 0 }
  0x64   : > { %260 = sbr.rel (%p1350_p5) target bundleno = 587 (0x24b), region = 36  ;;  %s1203_s22 = sshll.u32 (!%p1350_p5), %s1200_s20, 3 }
  0x65   : > { %s263_s13 = scalar_lea.sflag (!%p1350_p5), [#allocation4], %s1200_s20  ;;  %s266_s11 = scalar_lea.vmem (!%p1350_p5), [#allocation3], %s1203_s22 }
  0x6b   : > { %956 = dma.done.wait (%p1351_p0), %s263_s13, 128  }
  0x6c   : > { %958 = vsyncadd (%p1351_p0), %s263_s13, 4294967168  ;;  %p1352_p10 = scmp.eq.s32.totalorder %s1057_s0, 0 }
  0x6e   : > { %960 = dma.done.wait (%p1352_p10), [#allocation7], 528   ;;  %p1353_p11 = pmov %p1352_p10 }
  0x6f   : > { %v992_v0 = vmov 0.0|0.0   ;;  %vm993_vm0 = vmmov 0   ;;  %v994_v1 = vmov 0.0   ;;  %v313_v2 = vld [vmem:[#allocation6] sm:$0xff]  ;;  %v314_v3 = vld [vmem:[#allocation6 + $0x8] sm:$0xff]  ;;  %v315_v4 = vld [vmem:[#allocation6 + $0x10] sm:$0xff] }
  0x70   : > { %962 = vsyncadd (%p1353_p11), [#allocation7], 4294966768  ;;  %675 = vmatprep.subr.bf16.mxu0 %v992_v0  ;;  %672 = vmatprep.mubr.msk.f32.mxu0 %vm993_vm0, %v994_v1  ;;  %v676_v5 = vpack.c.bf16 %v314_v3, %v313_v2  ;;  %v316_v6 = vld [vmem:[#allocation6 + $0x18] sm:$0xff]  ;;  %vm324_vm1 = vcmask 261120   ;;  %v650_v9 = vld [vmem:[#allocation8] ss:$0 sm:$0xff] }
  0x71   : > { %v679_v7 = vpack.c.bf16 %v316_v6, %v315_v4  ;;  %v1215_v8 = vld [vmem:[%s266_s11] sm:$0xff]  ;;  %vm398_vm2 = vcmask 130048   ;;  %s305_s28 = scalar_lea.vmem [#allocation10], %s1203_s22  ;;  %s447_s30 = sand.u32 1, %s1057_s0  }
  0x72   : > { %677 = vmatpush3.bf16.msra.mxu0 %v676_v5  ;;  %s654_s16 = sshll.u32 %s1057_s0, 7  ;;  %s478_s14 = sshll.u32 %s305_s28, 4  ;;  %s479_s14 = int_to_ptr.vmem [resolvable:$true] %s478_s14 }
  0x73   : > { %678 = vmatprep.subr.bf16.mxu0 %v992_v0  ;;  %s1227_s19 = scalar_lea.hbm %s1338_s5, %s654_s16  ;;  %s1229_s12 = scalar_lea.sflag [#allocation11], %s447_s30 }
  0x74   : > { %s855_s15 = scalar_lea.vmem %s479_s14, 128  ;;  %s995_s17 = smov [#allocation10]  }
  0x75   : > { %p856_p1 = scmp.ne.s32.totalorder %s479_s14, %s855_s15  ;;  %s859_s9 = sshll.u32 %s995_s17, 4  ;;  %s860_s9 = int_to_ptr.vmem [resolvable:$false] %s859_s9 }
  0x76   : > { %680 = vmatpush3.bf16.msra.mxu0 %v679_v7  ;;  %s861_s13 = scalar_lea.vmem %s860_s9, 256  ;;  %p862_p8 = scmp.lt.s32.totalorder %s479_s14, %s860_s9 }
  0x77   : > { %p857_p2 = pnand %p856_p1, %p1151_p4  ;;  %p863_p13 = scmp.lt.s32.totalorder %s861_s13, %s855_s15 }
  0x79   : > { %673 = vmatmul.mubr.msk.f32.vlgmr.msra.gmra.mrb[0].mxu0 %vm324_vm1, %v1215_v8  ;;  %p858_p6 = pneg %p857_p2  ;;  %p864_p3 = por %p863_p13, %p862_p8 }
  0x7b   : > { %p865_p7 = pnand %p864_p3, %p858_p6 }
 0x14c   : > { %v394_v10 = vpop.f32.mrb[0].mxu0 }
 0x14d   : > { %v395_v11 = vadd.f32 %v650_v9, %v394_v10  ;;  %v674_v12 = vpop.f32.mrb[1].mxu0 }
 0x14f   : > { %v400_v13 = vmul.f32 %v395_v11, %v395_v11  ;;  %399 = vst.msk [vmem:[%s305_s28] sm:$0xff] %vm398_vm2, %v395_v11 }
 0x151   : > { %401 = vadd.xlane.f32.xlu0 %v400_v13 }
 0x152   : > { %868 = shalt.err (!%p865_p7)
}
 0x153   : > { %s869_s11 = scalar_lea.hbm %s1227_s19, 128  ;;  %s873_s8 = scalar_lea.hbm %s1338_s5, 512 }
 0x154   : > { %p870_p9 = scmp.ne.s32.totalorder %s1227_s19, %s869_s11  ;;  %p874_p0 = scmp.lt.u32.totalorder %s1227_s19, %s1338_s5 }
 0x155   : > { %p875_p10 = scmp.lt.u32.totalorder %s873_s8, %s869_s11  ;;  %p877_p1 = scmp.lt.u32.totalorder %s869_s11, %s1227_s19 }
 0x156   : > { %p871_p12 = pnand %p870_p9, %p1151_p4 }
 0x157   : > { %p876_p11 = por %p875_p10, %p874_p0 }
 0x158   : > { %p872_p5 = pneg %p871_p12 }
 0x159   : > { %p878_p2 = por %p877_p1, %p876_p11 }
 0x15b   : > { %p879_p6 = pnand %p878_p2, %p872_p5 }
 0x15d   : > { %882 = shalt.err (!%p879_p6)
}
 0x15e   : > { %692 = dma.vmem_to_hbm [thread:$0]  (%p1151_p4), %s479_s14, 128, %s1227_s19, %s1229_s12   ;;  %v433_v37 = vlaneseq  ;;  %vm440_vm5 = vcmask 57344  }
 0x15f   : > { %s418_s15 = sld [smem:[#allocation2]]  ;;  %s298_s19 = scalar_lea.vmem [#allocation9], %s1203_s22 }
 0x160   : > { %v434_v38 = vand.u32 127, %v433_v37  ;;  %v436_v39 = vshrl.u32 %v433_v37, 7  ;;  %s465_s14 = sshll.u32 %s298_s19, 4  ;;  %s656_s9 = sshll.u32 %s1057_s0, 4  ;;  %s1260_s14 = int_to_ptr.vmem [resolvable:$true] %s465_s14 }
 0x161   : > { %s311_s13 = scalar_lea.vmem [#allocation12], %s1200_s20  ;;  %s1258_s8 = scalar_lea.hbm %s1337_s4, %s654_s16 }
 0x162   : > { %v437_v40 = vsub.s32 %v434_v38, %v436_v39  ;;  %s491_s11 = sshll.u32 %s311_s13, 4  ;;  %s1265_s17 = scalar_lea.hbm %s1339_s6, %s656_s9  ;;  %s1267_s11 = int_to_ptr.vmem [resolvable:$true] %s491_s11 }
 0x163   : > { %s443_s0 = scalar_lea.sflag [#allocation5], %s1200_s20  ;;  %s996_s16 = smov [#allocation9]  }
 0x164   : > { %s887_s28 = sshll.u32 %s996_s16, 4  ;;  %s888_s28 = int_to_ptr.vmem [resolvable:$false] %s887_s28 }
 0x165   : > { %v419_v27 = vstv %s418_s15  ;;  %s883_s15 = scalar_lea.vmem %s1260_s14, 128  ;;  %s889_s30 = scalar_lea.vmem %s888_s28, 256 }
 0x166   : > { %p884_p8 = scmp.ne.s32.totalorder %s1260_s14, %s883_s15  ;;  %p890_p7 = scmp.lt.s32.totalorder %s1260_s14, %s888_s28 }
 0x167   : > { %p891_p9 = scmp.lt.s32.totalorder %s889_s30, %s883_s15 }
 0x168   : > { %p885_p13 = pnand %p884_p8, %p1151_p4 }
 0x169   : > { %p892_p12 = por %p891_p9, %p890_p7 }
 0x16a   : > { %p886_p3 = pneg %p885_p13 }
 0x16c   : > { %p893_p5 = pnand %p892_p12, %p886_p3 }
 0x1de   : > { %v402_v14 = vpop.xlane.xlu0 %401 }
 0x1df   : > { %763 = vrsqrt.f32 %v402_v14  ;;  %vm405_vm3 = vcmp.eq.f32.partialorder %v402_v14, inf  ;;  %v408_v17 = vand.u32 2147483648, %v402_v14  ;;  %vm407_vm4 = vcmp.eq.f32.partialorder %v402_v14, 0.0 }
 0x1e9   : > { %v764_v15 = vpop.eup %763 }
 0x1ea   : > { %v404_v16 = vmul.f32 %v764_v15, %v402_v14 }
 0x1ec   : > { %v406_v18 = vsel %vm405_vm3, %v402_v14, %v404_v16 }
 0x1ed   : > { %v409_v19 = vsel %vm407_vm4, %v408_v17, %v406_v18 }
 0x1ee   : > { %v410_v20 = vrot.slane %v409_v19, 4 }
 0x1f0   : > { %v411_v21 = vadd.f32 %v410_v20, %v409_v19 }
 0x1f2   : > { %v412_v22 = vrot.slane %v411_v21, 2 }
 0x1f4   : > { %v413_v23 = vadd.f32 %v412_v22, %v411_v21 }
 0x1f6   : > { %v414_v24 = vrot.slane %v413_v23, 1 }
 0x1f8   : > { %v415_v25 = vadd.f32 %v414_v24, %v413_v23 }
 0x1fa   : > { %765 = vrcp.f32 %v415_v25 }
 0x204   : > { %v766_v26 = vpop.eup %765 }
 0x205   : > { %v417_v28 = vmul.f32 %v766_v26, %v409_v19 }
 0x207   : > { %v420_v29 = vsub.f32 %v417_v28, %v419_v27 }
 0x209   : > { %v421_v30 = vmax.f32 %v420_v29, 0.0 }
 0x20b   : > { %v422_v31 = vrot.slane %v421_v30, 4 }
 0x20d   : > { %v423_v32 = vadd.f32 %v422_v31, %v421_v30 }
 0x20f   : > { %v424_v33 = vrot.slane %v423_v32, 2 }
 0x211   : > { %v425_v34 = vadd.f32 %v424_v33, %v423_v32 }
 0x213   : > { %v426_v35 = vrot.slane %v425_v34, 1 }
 0x215   : > { %v427_v36 = vadd.f32 %v426_v35, %v425_v34 }
 0x217   : > { %767 = vrcp.f32 %v427_v36 }
 0x221   : > { %v768_v41 = vpop.eup %767 }
 0x222   : > { %v429_v42 = vmul.f32 %v768_v41, %v421_v30 }
 0x224   : > { %v430_v43 = vmul.f32 %v429_v42, %v1215_v8  ;;  %v438_v44 = vrot.slane %v429_v42, %v437_v40 }
 0x226   : > { %431 = vst.msk [vmem:[%s298_s19] sm:$0xff] %vm324_vm1, %v430_v43 }
 0x227   : > { %441 = vst.msk [vmem:[%s311_s13] sm:$0x1] %vm440_vm5, %v438_v44 }
 0x228   : > { %896 = shalt.err (!%p893_p5)
}
 0x229   : > { %s897_s20 = scalar_lea.hbm %s1258_s8, 128  ;;  %s901_s13 = scalar_lea.hbm %s1337_s4, 512 }
 0x22a   : > { %p898_p0 = scmp.ne.s32.totalorder %s1258_s8, %s897_s20  ;;  %p902_p1 = scmp.lt.u32.totalorder %s1258_s8, %s1337_s4 }
 0x22b   : > { %p903_p2 = scmp.lt.u32.totalorder %s901_s13, %s897_s20  ;;  %p905_p8 = scmp.lt.u32.totalorder %s897_s20, %s1258_s8 }
 0x22c   : > { %p899_p10 = pnand %p898_p0, %p1151_p4 }
 0x22d   : > { %p904_p6 = por %p903_p2, %p902_p1 }
 0x22e   : > { %p900_p11 = pneg %p899_p10 }
 0x22f   : > { %p906_p13 = por %p905_p8, %p904_p6 }
 0x231   : > { %p907_p3 = pnand %p906_p13, %p900_p11 }
 0x233   : > { %910 = shalt.err (!%p907_p3)
}
 0x234   : > { %691 = dma.vmem_to_hbm [thread:$0]  (%p1151_p4), %s1260_s14, 128, %s1258_s8, %s443_s0  }
 0x235   : > { %s911_s15 = scalar_lea.vmem %s1267_s11, 16  ;;  %s997_s16 = smov [#allocation12]  }
 0x236   : > { %p912_p7 = scmp.ne.s32.totalorder %s1267_s11, %s911_s15  ;;  %s915_s28 = sshll.u32 %s997_s16, 4  ;;  %s916_s28 = int_to_ptr.vmem [resolvable:$false] %s915_s28 }
 0x237   : > { %s917_s30 = scalar_lea.vmem %s916_s28, 32  ;;  %p918_p5 = scmp.lt.s32.totalorder %s1267_s11, %s916_s28 }
 0x238   : > { %p913_p9 = pnand %p912_p7, %p1151_p4  ;;  %p919_p0 = scmp.lt.s32.totalorder %s917_s30, %s911_s15 }
 0x23a   : > { %p914_p12 = pneg %p913_p9  ;;  %p920_p10 = por %p919_p0, %p918_p5 }
 0x23c   : > { %p921_p11 = pnand %p920_p10, %p914_p12 }
 0x23e   : > { %924 = shalt.err (!%p921_p11)
}
 0x23f   : > { %s925_s14 = scalar_lea.hbm %s1265_s17, 16  ;;  %s929_s20 = scalar_lea.hbm %s1339_s6, 64 }
 0x240   : > { %p926_p1 = scmp.ne.s32.totalorder %s1265_s17, %s925_s14  ;;  %p930_p8 = scmp.lt.u32.totalorder %s1265_s17, %s1339_s6 }
 0x241   : > { %p931_p13 = scmp.lt.u32.totalorder %s929_s20, %s925_s14  ;;  %p933_p7 = scmp.lt.u32.totalorder %s925_s14, %s1265_s17 }
 0x242   : > { %p927_p2 = pnand %p926_p1, %p1151_p4 }
 0x243   : > { %p932_p3 = por %p931_p13, %p930_p8 }
 0x244   : > { %p928_p6 = pneg %p927_p2 }
 0x245   : > { %p934_p9 = por %p933_p7, %p932_p3 }
 0x247   : > { %p935_p12 = pnand %p934_p9, %p928_p6 }
 0x249   : > { %938 = shalt.err (!%p935_p12)
}
 0x24a   : > { %693 = dma.vmem_to_hbm [thread:$0]  (%p1151_p4), %s1267_s11, 16, %s1265_s17, %s1229_s12  }
 0x24b PF: > { %p723_p5 = scmp.ge.s32.totalorder %s985_s26, 2  ;;  %s503_s13 = sand.u32 1, %s973_s23  }
 0x24c   : > { %p1354_p0 = scmp.ne.s32.totalorder %s1344_s29, 0  ;;  %s504_s22 = scalar_lea.sflag [#allocation5], %s503_s13 }
 0x24e   : > { %p709_p10 = pnand %p723_p5, %p1354_p0 }
 0x250   : > { %964 = dma.done.wait (!%p709_p10), %s504_s22, 128  }
 0x251   : > { %966 = vsyncadd (!%p709_p10), %s504_s22, 4294967168  ;;  %s512_s18 = sand.u32 1, %s637_s27  }
 0x252   : > { %s513_s15 = scalar_lea.sflag [#allocation11], %s512_s18 }
 0x253   : > { %968 = dma.done.wait (!%p709_p10), %s513_s15, 144  }
 0x254   : > { %970 = vsyncadd (!%p709_p10), %s513_s15, 4294967152  ;;  %p25_p4 = scmp.ge.s32.totalorder %s1141_s21, 6   ;;  %s1355_s23 = smov %s977_s24 }
 0x255   : > { %s1356_s24 = smov %s981_s25  ;;  %s1357_s25 = smov %s1157_s10 }
 0x256   : > { %s1358_s26 = smov %s1141_s21  ;;  %27 = sbr.rel (!%p25_p4) target bundleno = 10 (0xa), region = 121 }
 0x25d   :  { %526 = vsyncpa [#allocation4], 1 }
 0x25e   :  { %528 = vsyncpa [#allocation4 + $0x1], 1 }
 0x25f   :  { %529 = vsyncpa [#allocation7], 1 }
 0x260   :  { %530 = vsyncpa [#allocation5], 1 }
 0x261   :  { %532 = vsyncpa [#allocation5 + $0x1], 1 }
 0x262   :  { %533 = vsyncpa [#allocation11], 1 }
 0x263   :  { %535 = vsyncpa [#allocation11 + $0x1], 1 }

// kernel: tpu_custom_call.1
= control target key start
LH: loop header
LB: loop body
LE: loop exit
PB: predicated region body
PF: predicated region fallthrough
CT: control target
= control target key end

     0   :  { %s1333_s0 = inlined_call_operand.<no memory space> [shape: f32[1], index: 0, kind: input, shape index: {}]   ;;  %s1334_s1 = inlined_call_operand.hbm [shape: f32[4,8,32], index: 1, kind: input, shape index: {}]   ;;  %s1335_s2 = inlined_call_operand.hbm [shape: f32[32,128], index: 2, kind: input, shape index: {}]   ;;  %s1336_s3 = inlined_call_operand.hbm [shape: f32[1,128], index: 3, kind: input, shape index: {}]   ;;  %s1337_s4 = inlined_call_operand.hbm [shape: f32[4,8,32], index: 4, kind: output, shape index: {0}]   ;;  %s1338_s5 = inlined_call_operand.hbm [shape: f32[4,8,16], index: 5, kind: output, shape index: {1}]   ;;  %s1339_s6 = inlined_call_operand.hbm [shape: f32[4,1,8], index: 6, kind: output, shape index: {2}]  }
   0x1   :  { %12 = sst [smem:[#allocation2]] %s1333_s0 }
   0x2   :  { %13 = vsyncpa [#allocation4], 0 }
   0x3   :  { %15 = vsyncpa [#allocation4 + $0x1], 0 }
   0x4   :  { %16 = vsyncpa [#allocation7], 0 }
   0x5   :  { %17 = vsyncpa [#allocation5], 0 }
   0x6   :  { %19 = vsyncpa [#allocation5 + $0x1], 0 }
   0x7   :  { %20 = vsyncpa [#allocation11], 0 }
   0x8   :  { %22 = vsyncpa [#allocation11 + $0x1], 0  ;;  %s1036_s23 = smov 0   ;;  %s1038_s24 = smov 0  }
   0x9   :  { %s1040_s25 = smov 0   ;;  %s1042_s26 = smov 0  }
   0xa LB: > { %s1057_s0 = sadd.s32 4294967295, %s985_s26   ;;  %s637_s27 = sadd.s32 4294967294, %s985_s26   ;;  %s985_s26 = sphi %s1042_s26, %s1358_s26   ;;  %s981_s25 = sphi %s1040_s25, %s1357_s25   ;;  %s977_s24 = sphi %s1038_s24, %s1356_s24   ;;  %s973_s23 = sphi %s1036_s23, %s1355_s23  }
   0xb   : > { %p69_p0 = scmp.ne.s32.totalorder %s977_s24, %s973_s23  ;;  %p1340_p1 = scmp.eq.s32.totalorder %s1057_s0, 0 }
   0xc   : > { %p141_p3 = scmp.eq.s32.totalorder %s637_s27, 3  ;;  %p638_p5 = scmp.ge.s32.totalorder %s985_s26, 1 }
   0xd   : > { %p1068_p4 = por %p1340_p1, %p69_p0  ;;  %p200_p7 = scmp.lt.s32.totalorder %s985_s26, 5 }
   0xe   : > { %p1073_p6 = por %p141_p3, %p69_p0  ;;  %s987_s7 = smov [#allocation6]  }
   0xf   : > { %s1343_s28 = scalar_select %p1068_p4, 1, 0 }
  0x10   : > { %s1344_s29 = scalar_select %p1073_p6, 1, 0 }
  0x11   : > { %p1078_p8 = pnand %p638_p5, %p200_p7  ;;  %s215_s8 = sshll.u32 %s987_s7, 4  ;;  %s216_s8 = int_to_ptr.vmem [resolvable:$true] %s215_s8 }
  0x12   : > { %s988_s10 = smov [#allocation8]   ;;  %s769_s14 = scalar_lea.hbm %s1335_s2, 512 }
  0x13   : > { %s1345_s30 = scalar_select %p1078_p8, 1, 0 }
  0x14   : > { %p697_p9 = pneg %p1078_p8  ;;  %s229_s11 = sshll.u32 %s988_s10, 4  ;;  %s1090_s11 = int_to_ptr.vmem [resolvable:$true] %s229_s11 }
  0x15   : > { %p770_p11 = scmp.ne.s32.totalorder %s1335_s2, %s769_s14  ;;  %p776_p3 = scmp.lt.u32.totalorder %s769_s14, %s1335_s2 }
  0x16   : > { %p1086_p10 = pnand %p697_p9, %p1340_p1 }
  0x18   : > { %p771_p12 = pneg %p1086_p10 }
  0x1a   : > { %p772_p13 = pnand %p771_p12, %p770_p11 }
  0x1c   : > { %p773_p0 = pneg %p772_p13 }
  0x1e   : > { %p778_p5 = pnand %p776_p3, %p773_p0 }
  0x20   : > { %781 = shalt.err (!%p778_p5)
}
  0x21   : > { %s782_s19 = scalar_lea.vmem %s216_s8, 512  ;;  %p790_p2 = scmp.lt.s32.totalorder %s216_s8, %s216_s8 }
  0x22   : > { %p783_p7 = scmp.ne.s32.totalorder %s216_s8, %s782_s19  ;;  %p791_p6 = scmp.lt.s32.totalorder %s782_s19, %s782_s19 }
  0x24   : > { %p785_p9 = pnand %p783_p7, %p771_p12  ;;  %p792_p4 = por %p791_p6, %p790_p2 }
  0x26   : > { %p786_p1 = pneg %p785_p9 }
  0x28   : > { %p793_p8 = pnand %p792_p4, %p786_p1 }
  0x2a   : > { %796 = shalt.err (!%p793_p8)
}
  0x2b   : > { %s989_s20 = smov 128   ;;  %s990_s21 = smov 8  }
  0x2c   : > { %700 = dma.hbm_to_vmem [thread:$0]  (!%p1086_p10), %s1335_s2, 512, %s216_s8, [#allocation7], %s989_s20, %s989_s20, %s990_s21  }
  0x2d   : > { %s797_s13 = scalar_lea.hbm %s1336_s3, 16 }
  0x2e   : > { %p798_p11 = scmp.ne.s32.totalorder %s1336_s3, %s797_s13  ;;  %p804_p4 = scmp.lt.u32.totalorder %s797_s13, %s1336_s3 }
  0x30   : > { %p800_p1 = pnand %p798_p11, %p771_p12 }
  0x32   : > { %p801_p2 = pneg %p800_p1 }
  0x34   : > { %p806_p6 = pnand %p804_p4, %p801_p2 }
  0x36   : > { %809 = shalt.err (!%p806_p6)
}
  0x37   : > { %s810_s8 = scalar_lea.vmem %s1090_s11, 16  ;;  %s817_s18 = scalar_lea.vmem %s1090_s11, 32 }
  0x38   : > { %p811_p8 = scmp.ne.s32.totalorder %s1090_s11, %s810_s8  ;;  %p818_p3 = scmp.lt.s32.totalorder %s1090_s11, %s1090_s11 }
  0x39   : > { %p819_p5 = scmp.lt.s32.totalorder %s817_s18, %s810_s8 }
  0x3a   : > { %p813_p13 = pnand %p811_p8, %p771_p12 }
  0x3b   : > { %p820_p7 = por %p819_p5, %p818_p3 }
  0x3c   : > { %p814_p0 = pneg %p813_p13 }
  0x3e   : > { %p821_p9 = pnand %p820_p7, %p814_p0 }
  0x40   : > { %824 = shalt.err (!%p821_p9)
}
  0x41   : > { %703 = dma.hbm_to_vmem [thread:$0]  (!%p1086_p10), %s1336_s3, 16, %s1090_s11, [#allocation7]  }
  0x42   : > { %s1141_s21 = sadd.s32 1, %s985_s26   ;;  %s56_s9 = sadd.s32 1, %s981_s25 }
  0x43   : > { %s53_s22 = ssub.s32 %s985_s26, %s1141_s21  ;;  %p63_p12 = scmp.ne.s32.totalorder %s981_s25, %s977_s24 }
  0x44   : > { %p54_p11 = scmp.eq.s32.totalorder %s53_s22, 0  ;;  %p64_p1 = scmp.eq.s32.totalorder %s985_s26, 0 }
  0x45   : > { %p1347_p2 = scmp.eq.s32.totalorder %s1057_s0, 3  ;;  %p720_p6 = scmp.lt.s32.totalorder %s985_s26, 4 }
  0x46   : > { %s1157_s10 = scalar_select %p54_p11, %s981_s25, %s56_s9  }
  0x47   : > { %p1151_p4 = por %p1347_p2, %p63_p12  ;;  %p65_p8 = por %p64_p1, %p63_p12 }
  0x48   : > { %s240_s12 = sand.u32 1, %s981_s25   ;;  %s643_s11 = sshll.u32 %s985_s26, 7 }
  0x49   : > { %s642_s13 = sshll.u32 %s240_s12, 3  ;;  %s1164_s16 = scalar_lea.hbm %s1334_s1, %s643_s11 }
  0x4a   : > { %s244_s17 = scalar_lea.vmem [#allocation3], %s642_s13  ;;  %p1168_p10 = pnand %p720_p6, %p65_p8 }
  0x4b   : > { %s251_s8 = sshll.u32 %s244_s17, 4  ;;  %s241_s19 = scalar_lea.sflag [#allocation4], %s240_s12  ;;  %s1166_s8 = int_to_ptr.vmem [resolvable:$true] %s251_s8 }
  0x4c   : > { %s825_s20 = scalar_lea.hbm %s1164_s16, 128  ;;  %p827_p0 = pneg %p1168_p10 }
  0x4d   : > { %p826_p13 = scmp.ne.s32.totalorder %s1164_s16, %s825_s20  ;;  %s830_s13 = scalar_lea.hbm %s1334_s1, 512 }
  0x4e   : > { %p831_p7 = scmp.lt.u32.totalorder %s1164_s16, %s1334_s1  ;;  %p832_p9 = scmp.lt.u32.totalorder %s830_s13, %s825_s20 }
  0x4f   : > { %p828_p3 = pnand %p827_p0, %p826_p13  ;;  %p834_p11 = scmp.lt.u32.totalorder %s825_s20, %s1164_s16 }
  0x50   : > { %p833_p12 = por %p832_p9, %p831_p7 }
  0x51   : > { %p829_p5 = pneg %p828_p3 }
  0x52   : > { %p835_p1 = por %p834_p11, %p833_p12 }
  0x54   : > { %p836_p2 = pnand %p835_p1, %p829_p5 }
  0x56   : > { %839 = shalt.err (!%p836_p2)
}
  0x57   : > { %s840_s12 = scalar_lea.vmem %s1166_s8, 128  ;;  %s991_s15 = smov [#allocation3]  }
  0x58   : > { %p841_p6 = scmp.ne.s32.totalorder %s1166_s8, %s840_s12  ;;  %s845_s17 = sshll.u32 %s991_s15, 4  ;;  %s846_s17 = int_to_ptr.vmem [resolvable:$false] %s845_s17 }
  0x59   : > { %s847_s9 = scalar_lea.vmem %s846_s17, 256  ;;  %p848_p3 = scmp.lt.s32.totalorder %s1166_s8, %s846_s17 }
  0x5a   : > { %p843_p8 = pnand %p841_p6, %p827_p0  ;;  %p849_p7 = scmp.lt.s32.totalorder %s847_s9, %s840_s12 }
  0x5c   : > { %p844_p13 = pneg %p843_p8  ;;  %p850_p9 = por %p849_p7, %p848_p3 }
  0x5e   : > { %p851_p12 = pnand %p850_p9, %p844_p13 }
  0x60   : > { %854 = shalt.err (!%p851_p12)
}
  0x61   : > { %707 = dma.hbm_to_vmem [thread:$0]  (!%p1168_p10), %s1164_s16, 128, %s1166_s8, %s241_s19  }
  0x62   : > { %p1350_p5 = scmp.ne.s32.totalorder %s1345_s30, 0 }
  0x63   : > { %s1200_s20 = sand.u32 (!%p1350_p5), 1, %s977_s24   ;;  %p1351_p0 = scmp.ne.s32.totalorder (!%p1350_p5), %s1343_s28, 0 }
  0x64   : > { %260 = sbr.rel (%p1350_p5) target bundleno = 587 (0x24b), region = 36  ;;  %s1203_s22 = sshll.u32 (!%p1350_p5), %s1200_s20, 3 }
  0x65   : > { %s263_s13 = scalar_lea.sflag (!%p1350_p5), [#allocation4], %s1200_s20  ;;  %s266_s11 = scalar_lea.vmem (!%p1350_p5), [#allocation3], %s1203_s22 }
  0x6b   : > { %956 = dma.done.wait (%p1351_p0), %s263_s13, 128  }
  0x6c   : > { %958 = vsyncadd (%p1351_p0), %s263_s13, 4294967168  ;;  %p1352_p10 = scmp.eq.s32.totalorder %s1057_s0, 0 }
  0x6e   : > { %960 = dma.done.wait (%p1352_p10), [#allocation7], 528   ;;  %p1353_p11 = pmov %p1352_p10 }
  0x6f   : > { %v992_v0 = vmov 0.0|0.0   ;;  %vm993_vm0 = vmmov 0   ;;  %v994_v1 = vmov 0.0   ;;  %v313_v2 = vld [vmem:[#allocation6] sm:$0xff]  ;;  %v314_v3 = vld [vmem:[#allocation6 + $0x8] sm:$0xff]  ;;  %v315_v4 = vld [vmem:[#allocation6 + $0x10] sm:$0xff] }
  0x70   : > { %962 = vsyncadd (%p1353_p11), [#allocation7], 4294966768  ;;  %675 = vmatprep.subr.bf16.mxu0 %v992_v0  ;;  %672 = vmatprep.mubr.msk.f32.mxu0 %vm993_vm0, %v994_v1  ;;  %v676_v5 = vpack.c.bf16 %v314_v3, %v313_v2  ;;  %v316_v6 = vld [vmem:[#allocation6 + $0x18] sm:$0xff]  ;;  %vm324_vm1 = vcmask 261120   ;;  %v650_v9 = vld [vmem:[#allocation8] ss:$0 sm:$0xff] }
  0x71   : > { %v679_v7 = vpack.c.bf16 %v316_v6, %v315_v4  ;;  %v1215_v8 = vld [vmem:[%s266_s11] sm:$0xff]  ;;  %vm398_vm2 = vcmask 130048   ;;  %s305_s28 = scalar_lea.vmem [#allocation10], %s1203_s22  ;;  %s447_s30 = sand.u32 1, %s1057_s0  }
  0x72   : > { %677 = vmatpush3.bf16.msra.mxu0 %v676_v5  ;;  %s654_s16 = sshll.u32 %s1057_s0, 7  ;;  %s478_s14 = sshll.u32 %s305_s28, 4  ;;  %s479_s14 = int_to_ptr.vmem [resolvable:$true] %s478_s14 }
  0x73   : > { %678 = vmatprep.subr.bf16.mxu0 %v992_v0  ;;  %s1227_s19 = scalar_lea.hbm %s1338_s5, %s654_s16  ;;  %s1229_s12 = scalar_lea.sflag [#allocation11], %s447_s30 }
  0x74   : > { %s855_s15 = scalar_lea.vmem %s479_s14, 128  ;;  %s995_s17 = smov [#allocation10]  }
  0x75   : > { %p856_p1 = scmp.ne.s32.totalorder %s479_s14, %s855_s15  ;;  %s859_s9 = sshll.u32 %s995_s17, 4  ;;  %s860_s9 = int_to_ptr.vmem [resolvable:$false] %s859_s9 }
  0x76   : > { %680 = vmatpush3.bf16.msra.mxu0 %v679_v7  ;;  %s861_s13 = scalar_lea.vmem %s860_s9, 256  ;;  %p862_p8 = scmp.lt.s32.totalorder %s479_s14, %s860_s9 }
  0x77   : > { %p857_p2 = pnand %p856_p1, %p1151_p4  ;;  %p863_p13 = scmp.lt.s32.totalorder %s861_s13, %s855_s15 }
  0x79   : > { %673 = vmatmul.mubr.msk.f32.vlgmr.msra.gmra.mrb[0].mxu0 %vm324_vm1, %v1215_v8  ;;  %p858_p6 = pneg %p857_p2  ;;  %p864_p3 = por %p863_p13, %p862_p8 }
  0x7b   : > { %p865_p7 = pnand %p864_p3, %p858_p6 }
 0x14c   : > { %v394_v10 = vpop.f32.mrb[0].mxu0 }
 0x14d   : > { %v395_v11 = vadd.f32 %v650_v9, %v394_v10  ;;  %v674_v12 = vpop.f32.mrb[1].mxu0 }
 0x14f   : > { %v400_v13 = vmul.f32 %v395_v11, %v395_v11  ;;  %399 = vst.msk [vmem:[%s305_s28] sm:$0xff] %vm398_vm2, %v395_v11 }
 0x151   : > { %401 = vadd.xlane.f32.xlu0 %v400_v13 }
 0x152   : > { %868 = shalt.err (!%p865_p7)
}
 0x153   : > { %s869_s11 = scalar_lea.hbm %s1227_s19, 128  ;;  %s873_s8 = scalar_lea.hbm %s1338_s5, 512 }
 0x154   : > { %p870_p9 = scmp.ne.s32.totalorder %s1227_s19, %s869_s11  ;;  %p874_p0 = scmp.lt.u32.totalorder %s1227_s19, %s1338_s5 }
 0x155   : > { %p875_p10 = scmp.lt.u32.totalorder %s873_s8, %s869_s11  ;;  %p877_p1 = scmp.lt.u32.totalorder %s869_s11, %s1227_s19 }
 0x156   : > { %p871_p12 = pnand %p870_p9, %p1151_p4 }
 0x157   : > { %p876_p11 = por %p875_p10, %p874_p0 }
 0x158   : > { %p872_p5 = pneg %p871_p12 }
 0x159   : > { %p878_p2 = por %p877_p1, %p876_p11 }
 0x15b   : > { %p879_p6 = pnand %p878_p2, %p872_p5 }
 0x15d   : > { %882 = shalt.err (!%p879_p6)
}
 0x15e   : > { %692 = dma.vmem_to_hbm [thread:$0]  (%p1151_p4), %s479_s14, 128, %s1227_s19, %s1229_s12   ;;  %v433_v37 = vlaneseq  ;;  %vm440_vm5 = vcmask 57344  }
 0x15f   : > { %s418_s15 = sld [smem:[#allocation2]]  ;;  %s298_s19 = scalar_lea.vmem [#allocation9], %s1203_s22 }
 0x160   : > { %v434_v38 = vand.u32 127, %v433_v37  ;;  %v436_v39 = vshrl.u32 %v433_v37, 7  ;;  %s465_s14 = sshll.u32 %s298_s19, 4  ;;  %s656_s9 = sshll.u32 %s1057_s0, 4  ;;  %s1260_s14 = int_to_ptr.vmem [resolvable:$true] %s465_s14 }
 0x161   : > { %s311_s13 = scalar_lea.vmem [#allocation12], %s1200_s20  ;;  %s1258_s8 = scalar_lea.hbm %s1337_s4, %s654_s16 }
 0x162   : > { %v437_v40 = vsub.s32 %v434_v38, %v436_v39  ;;  %s491_s11 = sshll.u32 %s311_s13, 4  ;;  %s1265_s17 = scalar_lea.hbm %s1339_s6, %s656_s9  ;;  %s1267_s11 = int_to_ptr.vmem [resolvable:$true] %s491_s11 }
 0x163   : > { %s443_s0 = scalar_lea.sflag [#allocation5], %s1200_s20  ;;  %s996_s16 = smov [#allocation9]  }
 0x164   : > { %s887_s28 = sshll.u32 %s996_s16, 4  ;;  %s888_s28 = int_to_ptr.vmem [resolvable:$false] %s887_s28 }
 0x165   : > { %v419_v27 = vstv %s418_s15  ;;  %s883_s15 = scalar_lea.vmem %s1260_s14, 128  ;;  %s889_s30 = scalar_lea.vmem %s888_s28, 256 }
 0x166   : > { %p884_p8 = scmp.ne.s32.totalorder %s1260_s14, %s883_s15  ;;  %p890_p7 = scmp.lt.s32.totalorder %s1260_s14, %s888_s28 }
 0x167   : > { %p891_p9 = scmp.lt.s32.totalorder %s889_s30, %s883_s15 }
 0x168   : > { %p885_p13 = pnand %p884_p8, %p1151_p4 }
 0x169   : > { %p892_p12 = por %p891_p9, %p890_p7 }
 0x16a   : > { %p886_p3 = pneg %p885_p13 }
 0x16c   : > { %p893_p5 = pnand %p892_p12, %p886_p3 }
 0x1de   : > { %v402_v14 = vpop.xlane.xlu0 %401 }
 0x1df   : > { %763 = vrsqrt.f32 %v402_v14  ;;  %vm405_vm3 = vcmp.eq.f32.partialorder %v402_v14, inf  ;;  %v408_v17 = vand.u32 2147483648, %v402_v14  ;;  %vm407_vm4 = vcmp.eq.f32.partialorder %v402_v14, 0.0 }
 0x1e9   : > { %v764_v15 = vpop.eup %763 }
 0x1ea   : > { %v404_v16 = vmul.f32 %v764_v15, %v402_v14 }
 0x1ec   : > { %v406_v18 = vsel %vm405_vm3, %v402_v14, %v404_v16 }
 0x1ed   : > { %v409_v19 = vsel %vm407_vm4, %v408_v17, %v406_v18 }
 0x1ee   : > { %v410_v20 = vrot.slane %v409_v19, 4 }
 0x1f0   : > { %v411_v21 = vadd.f32 %v410_v20, %v409_v19 }
 0x1f2   : > { %v412_v22 = vrot.slane %v411_v21, 2 }
 0x1f4   : > { %v413_v23 = vadd.f32 %v412_v22, %v411_v21 }
 0x1f6   : > { %v414_v24 = vrot.slane %v413_v23, 1 }
 0x1f8   : > { %v415_v25 = vadd.f32 %v414_v24, %v413_v23 }
 0x1fa   : > { %765 = vrcp.f32 %v415_v25 }
 0x204   : > { %v766_v26 = vpop.eup %765 }
 0x205   : > { %v417_v28 = vmul.f32 %v766_v26, %v409_v19 }
 0x207   : > { %v420_v29 = vsub.f32 %v417_v28, %v419_v27 }
 0x209   : > { %v421_v30 = vmax.f32 %v420_v29, 0.0 }
 0x20b   : > { %v422_v31 = vrot.slane %v421_v30, 4 }
 0x20d   : > { %v423_v32 = vadd.f32 %v422_v31, %v421_v30 }
 0x20f   : > { %v424_v33 = vrot.slane %v423_v32, 2 }
 0x211   : > { %v425_v34 = vadd.f32 %v424_v33, %v423_v32 }
 0x213   : > { %v426_v35 = vrot.slane %v425_v34, 1 }
 0x215   : > { %v427_v36 = vadd.f32 %v426_v35, %v425_v34 }
 0x217   : > { %767 = vrcp.f32 %v427_v36 }
 0x221   : > { %v768_v41 = vpop.eup %767 }
 0x222   : > { %v429_v42 = vmul.f32 %v768_v41, %v421_v30 }
 0x224   : > { %v430_v43 = vmul.f32 %v429_v42, %v1215_v8  ;;  %v438_v44 = vrot.slane %v429_v42, %v437_v40 }
 0x226   : > { %431 = vst.msk [vmem:[%s298_s19] sm:$0xff] %vm324_vm1, %v430_v43 }
 0x227   : > { %441 = vst.msk [vmem:[%s311_s13] sm:$0x1] %vm440_vm5, %v438_v44 }
 0x228   : > { %896 = shalt.err (!%p893_p5)
}
 0x229   : > { %s897_s20 = scalar_lea.hbm %s1258_s8, 128  ;;  %s901_s13 = scalar_lea.hbm %s1337_s4, 512 }
 0x22a   : > { %p898_p0 = scmp.ne.s32.totalorder %s1258_s8, %s897_s20  ;;  %p902_p1 = scmp.lt.u32.totalorder %s1258_s8, %s1337_s4 }
 0x22b   : > { %p903_p2 = scmp.lt.u32.totalorder %s901_s13, %s897_s20  ;;  %p905_p8 = scmp.lt.u32.totalorder %s897_s20, %s1258_s8 }
 0x22c   : > { %p899_p10 = pnand %p898_p0, %p1151_p4 }
 0x22d   : > { %p904_p6 = por %p903_p2, %p902_p1 }
 0x22e   : > { %p900_p11 = pneg %p899_p10 }
 0x22f   : > { %p906_p13 = por %p905_p8, %p904_p6 }
 0x231   : > { %p907_p3 = pnand %p906_p13, %p900_p11 }
 0x233   : > { %910 = shalt.err (!%p907_p3)
}
 0x234   : > { %691 = dma.vmem_to_hbm [thread:$0]  (%p1151_p4), %s1260_s14, 128, %s1258_s8, %s443_s0  }
 0x235   : > { %s911_s15 = scalar_lea.vmem %s1267_s11, 16  ;;  %s997_s16 = smov [#allocation12]  }
 0x236   : > { %p912_p7 = scmp.ne.s32.totalorder %s1267_s11, %s911_s15  ;;  %s915_s28 = sshll.u32 %s997_s16, 4  ;;  %s916_s28 = int_to_ptr.vmem [resolvable:$false] %s915_s28 }
 0x237   : > { %s917_s30 = scalar_lea.vmem %s916_s28, 32  ;;  %p918_p5 = scmp.lt.s32.totalorder %s1267_s11, %s916_s28 }
 0x238   : > { %p913_p9 = pnand %p912_p7, %p1151_p4  ;;  %p919_p0 = scmp.lt.s32.totalorder %s917_s30, %s911_s15 }
 0x23a   : > { %p914_p12 = pneg %p913_p9  ;;  %p920_p10 = por %p919_p0, %p918_p5 }
 0x23c   : > { %p921_p11 = pnand %p920_p10, %p914_p12 }
 0x23e   : > { %924 = shalt.err (!%p921_p11)
}
 0x23f   : > { %s925_s14 = scalar_lea.hbm %s1265_s17, 16  ;;  %s929_s20 = scalar_lea.hbm %s1339_s6, 64 }
 0x240   : > { %p926_p1 = scmp.ne.s32.totalorder %s1265_s17, %s925_s14  ;;  %p930_p8 = scmp.lt.u32.totalorder %s1265_s17, %s1339_s6 }
 0x241   : > { %p931_p13 = scmp.lt.u32.totalorder %s929_s20, %s925_s14  ;;  %p933_p7 = scmp.lt.u32.totalorder %s925_s14, %s1265_s17 }
 0x242   : > { %p927_p2 = pnand %p926_p1, %p1151_p4 }
 0x243   : > { %p932_p3 = por %p931_p13, %p930_p8 }
 0x244   : > { %p928_p6 = pneg %p927_p2 }
 0x245   : > { %p934_p9 = por %p933_p7, %p932_p3 }
 0x247   : > { %p935_p12 = pnand %p934_p9, %p928_p6 }
 0x249   : > { %938 = shalt.err (!%p935_p12)
}
 0x24a   : > { %693 = dma.vmem_to_hbm [thread:$0]  (%p1151_p4), %s1267_s11, 16, %s1265_s17, %s1229_s12  }
 0x24b PF: > { %p723_p5 = scmp.ge.s32.totalorder %s985_s26, 2  ;;  %s503_s13 = sand.u32 1, %s973_s23  }
 0x24c   : > { %p1354_p0 = scmp.ne.s32.totalorder %s1344_s29, 0  ;;  %s504_s22 = scalar_lea.sflag [#allocation5], %s503_s13 }
 0x24e   : > { %p709_p10 = pnand %p723_p5, %p1354_p0 }
 0x250   : > { %964 = dma.done.wait (!%p709_p10), %s504_s22, 128  }
 0x251   : > { %966 = vsyncadd (!%p709_p10), %s504_s22, 4294967168  ;;  %s512_s18 = sand.u32 1, %s637_s27  }
 0x252   : > { %s513_s15 = scalar_lea.sflag [#allocation11], %s512_s18 }
 0x253   : > { %968 = dma.done.wait (!%p709_p10), %s513_s15, 144  }
 0x254   : > { %970 = vsyncadd (!%p709_p10), %s513_s15, 4294967152  ;;  %p25_p4 = scmp.ge.s32.totalorder %s1141_s21, 6   ;;  %s1355_s23 = smov %s977_s24 }
 0x255   : > { %s1356_s24 = smov %s981_s25  ;;  %s1357_s25 = smov %s1157_s10 }
 0x256   : > { %s1358_s26 = smov %s1141_s21  ;;  %27 = sbr.rel (!%p25_p4) target bundleno = 10 (0xa), region = 121 }
 0x25d   :  { %526 = vsyncpa [#allocation4], 1 }
 0x25e   :  { %528 = vsyncpa [#allocation4 + $0x1], 1 }
 0x25f   :  { %529 = vsyncpa [#allocation7], 1 }
 0x260   :  { %530 = vsyncpa [#allocation5], 1 }
 0x261   :  { %532 = vsyncpa [#allocation5 + $0x1], 1 }
 0x262   :  { %533 = vsyncpa [#allocation11], 1 }
 0x263   :  { %535 = vsyncpa [#allocation11 + $0x1], 1 }

</bundles_post_ra>
